<compile_context>
chip_gen: v5e
topology: v5e:2x2
jax: 0.10.0
libtpu: 0.0.40
codegen_flags: <defaults>
</compile_context>

<pallas_src>
import functools

import jax
import jax.numpy as jnp
from jax.experimental import pallas as pl
from jax.experimental.pallas import tpu as pltpu


def _round_up(x: int, m: int) -> int:
    return (x + m - 1) // m * m


# --------------------------------------------------------------------------
# absolute mode:  out[b, s, :] = x[b, s, :] + pe[s, :]
# --------------------------------------------------------------------------
def _pe_abs_kernel(x_ref, pe_ref, o_ref):
    # x_ref: [1, bs, D]   pe_ref: [bs, D]   o_ref: [1, bs, D]
    o_ref[...] = x_ref[...] + pe_ref[...]


@functools.partial(jax.jit, static_argnames=("block_s",))
def positional_encoding_absolute(x, pe_table, *, block_s=512):
    """x: [B, S, D], pe_table: [max_len, D] (the nn.Embedding weight)."""
    B, S, D = x.shape
    bs = min(block_s, _round_up(S, 8))          # big tile, (8,128)-aligned sublane dim
    S_pad = _round_up(S, bs)

    pe = pe_table[:S]                            # positions are arange(S): gather == slice
    if S_pad != S:
        x = jnp.pad(x, ((0, 0), (0, S_pad - S), (0, 0)))
        pe = jnp.pad(pe, ((0, S_pad - S), (0, 0)))
    pe = pe.astype(x.dtype)

    out = pl.pallas_call(
        _pe_abs_kernel,
        out_shape=jax.ShapeDtypeStruct((B, S_pad, D), x.dtype),
        grid_spec=pltpu.PrefetchScalarGridSpec(
            num_scalar_prefetch=0,
            grid=(B, S_pad // bs),
            in_specs=[
                pl.BlockSpec((1, bs, D), lambda b, s: (b, s, 0)),
                pl.BlockSpec((bs, D), lambda b, s: (s, 0)),
            ],
            out_specs=pl.BlockSpec((1, bs, D), lambda b, s: (b, s, 0)),
        ),
        compiler_params=pltpu.CompilerParams(
            dimension_semantics=("parallel", "parallel")),
    )(x, pe)
    return out[:, :S, :] if S_pad != S else out


# --------------------------------------------------------------------------
# relative mode:  out[b, i, :] = x[b, i, :] + sum_j rel_k[clamp(i-j,-M,M)+M, :]
#                 = x[b, i, :] + (C @ rel_k)[i, :]   with C[i, r] = #{ j : clamp(i-j)+M == r }
# --------------------------------------------------------------------------
def _pe_rel_kernel(x_ref, c_ref, rk_ref, o_ref, bias_ref):
    # x_ref: [1, bs, D]   c_ref: [bs, R]   rk_ref: [R, D]   bias_ref (scratch): [bs, D] f32
    # The bias only depends on the seq tile — compute it once (batch is the inner grid axis).
    @pl.when(pl.program_id(1) == 0)
    def _():
        bias_ref[...] = jnp.dot(c_ref[...], rk_ref[...],
                                preferred_element_type=jnp.float32)

    o_ref[...] = x_ref[...] + bias_ref[...].astype(o_ref.dtype)


def _relative_counts(S: int, M: int) -> jnp.ndarray:
    """counts[i, r] = #{ j in [0, S) : clamp(i - j, -M, M) + M == r }  (float32, [S, 2M+1])."""
    R = 2 * M + 1
    if M == 0:
        return jnp.full((S, 1), float(S), jnp.float32)
    i = jnp.arange(S)[:, None]                    # [S, 1]
    d = jnp.arange(R)[None, :] - M                # [1, R]  exact relative distance per column
    j = i - d                                     # the unique j giving distance d (when unclamped)
    counts = ((j >= 0) & (j < S)).astype(jnp.float32)
    # Boundary columns absorb all clamped j's.
    left = jnp.maximum(0, S - i[:, 0] - M).astype(jnp.float32)    # clamp at -M: j >= i + M
    right = jnp.maximum(0, i[:, 0] - M + 1).astype(jnp.float32)   # clamp at +M: j <= i - M
    counts = counts.at[:, 0].set(left)
    counts = counts.at[:, R - 1].set(right)
    return counts


@functools.partial(jax.jit, static_argnames=("max_rel_dist", "block_s"))
def positional_encoding_relative(x, rel_k, *, max_rel_dist, block_s=512):
    """x: [B, S, D], rel_k: [2*max_rel_dist+1, D] parameter."""
    B, S, D = x.shape
    M = max_rel_dist
    R = 2 * M + 1
    assert rel_k.shape == (R, D)

    bs = min(block_s, _round_up(S, 8))
    S_pad = _round_up(S, bs)

    counts = _relative_counts(S, M)               # [S, R] — data-independent, same role as torch.arange
    if S_pad != S:
        x = jnp.pad(x, ((0, 0), (0, S_pad - S), (0, 0)))
        counts = jnp.pad(counts, ((0, S_pad - S), (0, 0)))

    out = pl.pallas_call(
        _pe_rel_kernel,
        out_shape=jax.ShapeDtypeStruct((B, S_pad, D), x.dtype),
        grid_spec=pltpu.PrefetchScalarGridSpec(
            num_scalar_prefetch=0,
            grid=(S_pad // bs, B),                # batch innermost -> bias reused across batch
            in_specs=[
                pl.BlockSpec((1, bs, D), lambda s, b: (b, s, 0)),
                pl.BlockSpec((bs, R), lambda s, b: (s, 0)),
                pl.BlockSpec((R, D), lambda s, b: (0, 0)),   # full rel_k table resident in VMEM
            ],
            out_specs=pl.BlockSpec((1, bs, D), lambda s, b: (b, s, 0)),
            scratch_shapes=[pltpu.VMEM((bs, D), jnp.float32)],
        ),
        compiler_params=pltpu.CompilerParams(
            dimension_semantics=("parallel", "arbitrary")),
    )(x, counts, rel_k.astype(jnp.float32))
    return out[:, :S, :] if S_pad != S else out


if __name__ == "__main__":
    # Small deterministic example consistent with the module: batch=2, seq=8, d_model=128, max_len=16.
    key = jax.random.PRNGKey(0)
    B, S, D, MAX_LEN = 2, 8, 128, 16
    k_x, k_pe, k_rel, k_rel2 = jax.random.split(key, 4)

    x = jax.random.normal(k_x, (B, S, D), jnp.float32)

    # ---- absolute mode (module default) ----
    pe_table = jax.random.normal(k_pe, (MAX_LEN, D), jnp.float32)   # nn.Embedding(max_len, d_model)
    out_abs = jax.block_until_ready(positional_encoding_absolute(x, pe_table))
    ref_abs = x + pe_table[:S][None]
    assert out_abs.shape == (B, S, D)
    assert jnp.allclose(out_abs, ref_abs, atol=1e-5, rtol=1e-5), "absolute-mode mismatch"

    # ---- relative mode (max_rel_dist > seq: no clamping active) ----
    # (The PyTorch init uses `//` (floor-div) on randn — almost certainly a typo; the forward pass only
    #  needs rel_k as a [2*max_len+1, d_model] parameter, so a random table is used here.)
    rel_k = jax.random.normal(k_rel, (2 * MAX_LEN + 1, D), jnp.float32)
    out_rel = jax.block_until_ready(
        positional_encoding_relative(x, rel_k, max_rel_dist=MAX_LEN))
    idx = jnp.arange(S)
    rel = jnp.clip(idx[:, None] - idx[None, :], -MAX_LEN, MAX_LEN) + MAX_LEN
    ref_rel = x + rel_k[rel].sum(axis=1)[None]
    assert out_rel.shape == (B, S, D)
    assert jnp.allclose(out_rel, ref_rel, atol=1e-3, rtol=1e-3), "relative-mode mismatch"

    # ---- relative mode (max_rel_dist < seq: clamping active, exercises closed-form counts) ----
    M2 = 3
    rel_k2 = jax.random.normal(k_rel2, (2 * M2 + 1, D), jnp.float32)
    out_rel2 = jax.block_until_ready(
        positional_encoding_relative(x, rel_k2, max_rel_dist=M2))
    rel2 = jnp.clip(idx[:, None] - idx[None, :], -M2, M2) + M2
    ref_rel2 = x + rel_k2[rel2].sum(axis=1)[None]
    assert jnp.allclose(out_rel2, ref_rel2, atol=1e-3, rtol=1e-3), "relative-mode (clamped) mismatch"

    print("KERNEL_OK")
</pallas_src>

<mosaic_0001>
module attributes {stable_mosaic.version = 11 : i64} {
  func.func @_pe_abs_kernel(%arg0: i32, %arg1: i32, %arg2: memref<1x8x128xf32, #tpu.memory_space<vmem>>, %arg3: memref<8x128xf32, #tpu.memory_space<vmem>>, %arg4: memref<1x8x128xf32, #tpu.memory_space<vmem>>) attributes {dimension_semantics = [#tpu.dimension_semantics<parallel>, #tpu.dimension_semantics<parallel>], iteration_bounds = array<i64: 2, 1>, scalar_prefetch = 0 : i64, scratch_operands = 0 : i64, tpu.core_type = #tpu.core_type<tc>, window_params = [{transform_indices = @transform_0, window_bounds = array<i64: 1, 8, 128>}, {transform_indices = @transform_1, window_bounds = array<i64: 8, 128>}, {transform_indices = @transform_2, window_bounds = array<i64: 1, 8, 128>}]} {
    %c0 = arith.constant 0 : index
    %c0_0 = arith.constant 0 : index
    %c0_1 = arith.constant 0 : index
    %0 = vector.load %arg2[%c0, %c0_0, %c0_1] : memref<1x8x128xf32, #tpu.memory_space<vmem>>, vector<1x8x128xf32>
    %c0_2 = arith.constant 0 : index
    %c0_3 = arith.constant 0 : index
    %1 = vector.load %arg3[%c0_2, %c0_3] : memref<8x128xf32, #tpu.memory_space<vmem>>, vector<8x128xf32>
    %2 = vector.shape_cast %1 : vector<8x128xf32> to vector<1x8x128xf32>
    %3 = arith.addf %0, %2 : vector<1x8x128xf32>
    %c0_4 = arith.constant 0 : index
    %c0_5 = arith.constant 0 : index
    %c0_6 = arith.constant 0 : index
    %4 = vector.load %arg4[%c0_4, %c0_5, %c0_6] : memref<1x8x128xf32, #tpu.memory_space<vmem>>, vector<1x8x128xf32>
    tpu.vector_store %arg4[%c0_4, %c0_5, %c0_6], %3 {strides = array<i32>} : memref<1x8x128xf32, #tpu.memory_space<vmem>>, vector<1x8x128xf32>,
    return
  }
  func.func @transform_0(%arg0: i32, %arg1: i32) -> (i32, i32, i32) {
    %c0_i32 = arith.constant 0 : i32
    %c0_i32_0 = arith.constant 0 : i32
    return %arg0, %arg1, %c0_i32 : i32, i32, i32
  }
  func.func @transform_1(%arg0: i32, %arg1: i32) -> (i32, i32) {
    %c0_i32 = arith.constant 0 : i32
    %c0_i32_0 = arith.constant 0 : i32
    return %arg1, %c0_i32 : i32, i32
  }
  func.func @transform_2(%arg0: i32, %arg1: i32) -> (i32, i32, i32) {
    %c0_i32 = arith.constant 0 : i32
    %c0_i32_0 = arith.constant 0 : i32
    return %arg0, %arg1, %c0_i32 : i32, i32, i32
  }
}

</mosaic_0001>

<bundles_post_ra>
// kernel: positional_encoding_absolute.1
= control target key start
LH: loop header
LB: loop body
LE: loop exit
PB: predicated region body
PF: predicated region fallthrough
CT: control target
= control target key end

     0   :  { %7 = vsyncpa [#allocation3], 0  ;;  %s639_s0 = inlined_call_operand.hbm [shape: f32[2,8,128], index: 0, kind: input, shape index: {}]   ;;  %s640_s1 = inlined_call_operand.vmem [shape: f32[8,128], index: 1, kind: input, shape index: {}]   ;;  %s641_s2 = inlined_call_operand.hbm [shape: f32[2,8,128], index: 2, kind: output, shape index: {}]  }
   0x1   :  { %9 = vsyncpa [#allocation3 + $0x1], 0 }
   0x2   :  { %10 = vsyncpa [#allocation4], 0 }
   0x3   :  { %12 = vsyncpa [#allocation4 + $0x1], 0  ;;  %s516_s9 = smov 0   ;;  %s518_s10 = smov 0  }
   0x4   :  { %s520_s11 = smov 0   ;;  %s522_s12 = smov 0  }
   0x5   :  { %s524_s13 = smov 0   ;;  %s526_s14 = smov 0  }
   0x6 LB: > { %s311_s15 = sadd.s32 4294967295, %s499_s14   ;;  %s312_s16 = sadd.s32 4294967294, %s499_s14   ;;  %s499_s14 = sphi %s526_s14, %s18_s14   ;;  %s495_s13 = sphi %s524_s13, %s650_s13   ;;  %s491_s12 = sphi %s522_s12, %s649_s12   ;;  %s487_s11 = sphi %s520_s11, %s648_s11   ;;  %s483_s10 = sphi %s518_s10, %s647_s10   ;;  %s479_s9 = sphi %s516_s9, %s646_s9  }
   0x7   : > { %s30_s17 = sadd.s32 1, %s495_s13  ;;  %s39_s18 = sadd.s32 1, %s487_s11 }
   0x8   : > { %p32_p0 = scmp.ge.s32.totalorder %s30_s17, 2  ;;  %p46_p1 = scmp.ne.s32.totalorder %s487_s11, %s483_s10 }
   0x9   : > { %p47_p2 = scmp.eq.s32.totalorder %s499_s14, 0  ;;  %p52_p3 = scmp.ne.s32.totalorder %s483_s10, %s479_s9 }
   0xa   : > { %s652_s17 = smov (%p32_p0, %s30_s17), 0  ;;  %p53_p5 = scmp.eq.s32.totalorder %s311_s15, 0 }
   0xb   : > { %p557_p4 = por %p47_p2, %p46_p1  ;;  %s34_s20 = ssub.s32 %s495_s13, %s652_s17 }
   0xc   : > { %p104_p6 = scmp.eq.s32.totalorder %s311_s15, 1  ;;  %p37_p7 = scmp.eq.s32.totalorder %s34_s20, 0 }
   0xd   : > { %p563_p8 = por %p53_p5, %p52_p3  ;;  %p110_p10 = scmp.eq.s32.totalorder %s312_s16, 1 }
   0xe   : > { %p567_p9 = por %p104_p6, %p46_p1  ;;  %p315_p12 = scmp.ge.s32.totalorder %s499_s14, 2 }
   0xf   : > { %s572_s23 = scalar_select %p37_p7, %s487_s11, %s39_s18  }
  0x10   : > { %p574_p11 = por %p110_p10, %p52_p3  ;;  %p337_p13 = scmp.lt.s32.totalorder %s499_s14, 2 }
  0x11   : > { %s137_s25 = sand.u32 1, %s487_s11   ;;  %s317_s27 = sshll.u32 %s495_s13, 3 }
  0x12   : > { %s316_s26 = sshll.u32 %s137_s25, 3  ;;  %s146_s30 = scalar_lea.hbm %s639_s0, %s317_s27 }
  0x13   : > { %s141_s3 = scalar_lea.vmem [#allocation2], %s316_s26  ;;  %s148_s5 = sshll.u32 %s146_s30, 4  ;;  %s149_s5 = int_to_ptr.hbm [resolvable:$true] %s148_s5 }
  0x14   : > { %s150_s4 = sshll.u32 %s141_s3, 4  ;;  %p330_p0 = pnand %p337_p13, %p557_p4  ;;  %s151_s4 = int_to_ptr.vmem [resolvable:$true] %s150_s4 }
  0x15   : > { %p318_p1 = scmp.ge.s32.totalorder %s499_s14, 1  ;;  %p155_p2 = scmp.lt.s32.totalorder %s499_s14, 3 }
  0x16   : > { %s138_s6 = scalar_lea.sflag [#allocation3], %s137_s25 }
  0x17   : > { %332 = dma.hbm_to_vmem [thread:$0]  (!%p330_p0), %s149_s5, 128, %s151_s4, %s138_s6  }
  0x18   : > { %p156_p3 = pnand %p318_p1, %p155_p2 }
  0x19   : > { %s590_s7 = sand.u32 (!%p156_p3), 1, %s483_s10  }
  0x1a   : > { %159 = sbr.rel (%p156_p3) target bundleno = 47 (0x2f), region = 28  ;;  %s319_s8 = sshll.u32 (!%p156_p3), %s590_s7, 3 }
  0x1b   : > { %s162_s15 = scalar_lea.sflag (!%p156_p3), [#allocation3], %s590_s7  ;;  %s165_s16 = scalar_lea.vmem (!%p156_p3), [#allocation2], %s319_s8 }
  0x1f   : > { %470 = dma.done.wait (%p563_p8), %s162_s15, 128  }
  0x20   : > { %472 = vsyncadd (%p563_p8), %s162_s15, 4294967168  ;;  %s322_s18 = sshll.u32 %s491_s12, 3  ;;  %s190_s26 = scalar_lea.vmem [#allocation5], %s319_s8  ;;  %v195_v0 = vld [vmem:[%s165_s16] sm:$0xff] }
  0x21   : > { %s211_s25 = scalar_lea.hbm %s641_s2, %s322_s18  ;;  %s213_s27 = sshll.u32 %s190_s26, 4  ;;  %v196_v1 = vld [vmem:[%s640_s1] sm:$0xff]  ;;  %s214_s27 = int_to_ptr.vmem [resolvable:$true] %s213_s27 }
  0x22   : > { %s215_s28 = sshll.u32 %s211_s25, 4  ;;  %v197_v2 = vadd.f32 %v196_v1, %v195_v0  ;;  %s200_s21 = scalar_lea.sflag [#allocation4], %s590_s7  ;;  %s216_s28 = int_to_ptr.hbm [resolvable:$true] %s215_s28 }
  0x23   : > { %s431_s3 = sshra.s32 %s216_s28, 4  ;;  %s437_s6 = scalar_lea.hbm %s641_s2, 16  ;;  %s432_s3 = int_to_ptr.hbm [resolvable:$true] %s431_s3 }
  0x24   : > { %198 = vst [vmem:[%s190_s26] sm:$0xff] %v197_v2  ;;  %s433_s12 = scalar_lea.hbm %s432_s3, 8  ;;  %p438_p7 = scmp.lt.s32.totalorder %s432_s3, %s641_s2 }
  0x25   : > { %p434_p4 = scmp.ne.s32.totalorder %s432_s3, %s433_s12  ;;  %p439_p8 = scmp.lt.s32.totalorder %s437_s6, %s433_s12 }
  0x27   : > { %p435_p5 = pnand %p434_p4, %p567_p9  ;;  %p440_p10 = por %p439_p8, %p438_p7 }
  0x29   : > { %p436_p6 = pneg %p435_p5 }
  0x2b   : > { %p441_p13 = pnand %p440_p10, %p436_p6 }
  0x2d   : > { %444 = shalt.err (!%p441_p13)
}
  0x2e   : > { %327 = dma.vmem_to_hbm [thread:$0]  (%p567_p9), %s214_s27, 128, %s216_s28, %s200_s21  }
  0x2f PF: > { %s227_s7 = sand.u32 1, %s479_s9   ;;  %p334_p0 = pnand %p315_p12, %p574_p11 }
  0x30   : > { %s228_s16 = scalar_lea.sflag [#allocation4], %s227_s7 }
  0x31   : > { %p335_p1 = pneg %p334_p0 }
  0x33   : > { %474 = dma.done.wait (%p335_p1), %s228_s16, 128  }
  0x34   : > { %476 = vsyncadd (%p335_p1), %s228_s16, 4294967168  ;;  %s18_s14 = sadd.s32 1, %s499_s14   ;;  %s646_s9 = smov %s483_s10 }
  0x35   : > { %p15_p2 = scmp.ge.s32.totalorder %s18_s14, 4   ;;  %s647_s10 = smov %s487_s11 }
  0x36   : > { %s648_s11 = smov %s572_s23  ;;  %s649_s12 = smov %s495_s13 }
  0x37   : > { %s650_s13 = smov %s652_s17  ;;  %17 = sbr.rel (!%p15_p2) target bundleno = 6 (0x6), region = 76 }
  0x3c   :  { %234 = vsyncpa [#allocation3], 1 }
  0x3d   :  { %236 = vsyncpa [#allocation3 + $0x1], 1 }
  0x3e   :  { %237 = vsyncpa [#allocation4], 1 }
  0x3f   :  { %239 = vsyncpa [#allocation4 + $0x1], 1 }

</bundles_post_ra>
